<compile_context>
chip_gen: v7x
topology: tpu7x:2x2x1
jax: 0.10.0
libtpu: 0.0.40
codegen_flags: <defaults>
</compile_context>

<pallas_src>
import numpy as np
import jax
import jax.numpy as jnp
from jax.experimental import pallas as pl
from jax.experimental.pallas import tpu as pltpu

A_CUBIC = -0.75  # PyTorch bicubic coefficient


# ----------------------------- weight-matrix construction (host glue) -----------------------------
def _cubic_weights(t, a=A_CUBIC):
    def c1(x):  # |x| <= 1
        return ((a + 2.0) * x - (a + 3.0)) * x * x + 1.0

    def c2(x):  # 1 < |x| <= 2
        return ((a * x - 5.0 * a) * x + 8.0 * a) * x - 4.0 * a

    # weights for taps at i0-1, i0, i0+1, i0+2 (matches ATen get_cubic_upsample_coefficients)
    return np.array([c2(t + 1.0), c1(t), c1(1.0 - t), c2(2.0 - t)], dtype=np.float64)


def _bicubic_matrix(n_in, n_out):
    """(n_out, n_in) float64 linear map = 1-D bicubic upsample with align_corners=True."""
    W = np.zeros((n_out, n_in), dtype=np.float64)
    if n_in == 1 or n_out == 1:
        W[:, 0] = 1.0
        return W
    for o in range(n_out):
        src = o * (n_in - 1) / (n_out - 1)  # align_corners=True mapping
        i0 = int(np.floor(src))
        t = src - i0
        w = _cubic_weights(t)
        for k in range(4):
            idx = min(max(i0 - 1 + k, 0), n_in - 1)  # boundary-clamped taps (as in ATen)
            W[o, idx] += w[k]
    return W


def _crop_pad_rows(n_up, n_target):
    """Row-gather indices implementing the center-crop / replicate-pad in UpReshape.forward."""
    if n_up >= n_target:
        diff = n_up - n_target
        return np.arange(n_target) + diff // 2
    pad = n_target - n_up
    top = pad // 2
    return np.clip(np.arange(n_target) - top, 0, n_up - 1)


def _fused_weight(H2, W2, H1, W1, scale_factor):
    """(H2*W2, H1*W1) float64: bicubic upsample + crop/replicate-pad fused into one linear map."""
    Ah = _bicubic_matrix(H2, H2 * scale_factor)[_crop_pad_rows(H2 * scale_factor, H1)]  # (H1, H2)
    Aw = _bicubic_matrix(W2, W2 * scale_factor)[_crop_pad_rows(W2 * scale_factor, W1)]  # (W1, W2)
    # out[n, p*W1+q] = sum_{h,w} x[n, h*W2+w] * Ah[p,h] * Aw[q,w]   <=>   x2d @ kron(Ah, Aw).T
    return np.kron(Ah, Aw).T  # (H2*W2, H1*W1)


def _round_up(x, m):
    return ((x + m - 1) // m) * m


# ---------------------------------------- Pallas kernel ----------------------------------------
def _upreshape_kernel(x_ref, w_ref, o_ref):
    # x_ref: (TM, H2*W2)   w_ref: (H2*W2, H1*W1)   o_ref: (TM, H1*W1)
    # Single MXU matmul per grid step: batch folded into rows, lane-dense output columns.
    o_ref[...] = jnp.dot(
        x_ref[...], w_ref[...], preferred_element_type=jnp.float32
    ).astype(o_ref.dtype)


def up_reshape(x1, x2, scale_factor=2, row_tile=512):
    """Pallas implementation of UpReshape.forward(x1, x2). Returns (B, C, H1, W1)."""
    B, C, H2, W2 = x2.shape
    _, _, H1, W1 = x1.shape
    N, K, P = B * C, H2 * W2, H1 * W1

    w_mat = jnp.asarray(_fused_weight(H2, W2, H1, W1, scale_factor).astype(np.float32))  # (K, P)

    out_dtype = x2.dtype
    x2d = x2.reshape(N, K).astype(jnp.float32)  # contiguous reshape only; no transpose needed

    # Row tile: multiple of 8 sublanes, capped at `row_tile`. 512 rows => ~0.65 MB in+out per
    # step (double-buffered ~1.3 MB + 64 KB resident weight), well under every generation's
    # 32 MiB scoped-VMEM default (incl. v7x); big enough to hide per-step overhead; multi-step
    # "parallel" grid on large batches lets v7x's two TensorCores split the work.
    tm = min(_round_up(N, 8), row_tile)
    n_pad = _round_up(N, tm)
    if n_pad != N:
        x2d = jnp.pad(x2d, ((0, n_pad - N), (0, 0)))
    grid = (n_pad // tm,)

    cost = pl.CostEstimate(
        flops=2 * n_pad * K * P,
        transcendentals=0,
        bytes_accessed=(n_pad * K + K * P + n_pad * P) * 4,
    )

    out2d = pl.pallas_call(
        _upreshape_kernel,
        out_shape=jax.ShapeDtypeStruct((n_pad, P), jnp.float32),
        grid_spec=pltpu.PrefetchScalarGridSpec(
            num_scalar_prefetch=0,
            grid=grid,
            in_specs=[
                pl.BlockSpec((tm, K), lambda i: (i, 0)),   # one row-tile of slabs per step
                pl.BlockSpec((K, P), lambda i: (0, 0)),    # fused weight, resident / shared
            ],
            out_specs=pl.BlockSpec((tm, P), lambda i: (i, 0)),  # lane-dense: last dim = H1*W1
        ),
        compiler_params=pltpu.CompilerParams(dimension_semantics=("parallel",)),
        cost_estimate=cost,
    )(x2d, w_mat)

    return out2d[:N].reshape(B, C, H1, W1).astype(out_dtype)


# -------------------------------------------- main --------------------------------------------
if __name__ == "__main__":
    key = jax.random.PRNGKey(0)
    k1, k2 = jax.random.split(key)

    # x1 supplies only the target spatial shape; x2 is bicubic-upsampled (x2) then cropped/padded.
    x1 = jax.random.normal(k1, (2, 4, 16, 16), dtype=jnp.float32)
    x2 = jax.random.normal(k2, (2, 4, 7, 9), dtype=jnp.float32)   # -> up to (14, 18): pad H, crop W

    out = jax.block_until_ready(up_reshape(x1, x2, scale_factor=2))
    assert out.shape == (2, 4, 16, 16), out.shape

    # Ground-truth check against a float64 host evaluation of the same fused linear map.
    B, C, H2, W2 = x2.shape
    _, _, H1, W1 = x1.shape
    w_ref = _fused_weight(H2, W2, H1, W1, 2)                                   # float64 (K, P)
    x_np = np.asarray(x2, dtype=np.float64).reshape(B * C, H2 * W2)
    ref = (x_np @ w_ref).reshape(B, C, H1, W1)
    # Typical observed error is ~1e-6; tolerance leaves headroom in case the backend uses a
    # reduced-precision MXU pass for f32 matmuls. Any indexing/layout bug would be O(1).
    err = np.max(np.abs(np.asarray(out, dtype=np.float64) - ref))
    assert err < 2e-2, f"max abs err {err}"

    print("KERNEL_OK")
</pallas_src>

<mosaic_0001>
module attributes {stable_mosaic.version = 11 : i64} {
  func.func @_upreshape_kernel(%arg0: i32, %arg1: memref<8x63xf32, #tpu.memory_space<vmem>>, %arg2: memref<63x256xf32, #tpu.memory_space<vmem>>, %arg3: memref<8x256xf32, #tpu.memory_space<vmem>>) attributes {dimension_semantics = [#tpu.dimension_semantics<parallel>], iteration_bounds = array<i64: 1>, scalar_prefetch = 0 : i64, scratch_operands = 0 : i64, tpu.core_type = #tpu.core_type<tc>, window_params = [{transform_indices = @transform_0, window_bounds = array<i64: 8, 63>}, {pipeline_mode = #tpu.pipeline_mode<synchronous>, transform_indices = @transform_1, window_bounds = array<i64: 63, 256>}, {transform_indices = @transform_2, window_bounds = array<i64: 8, 256>}]} {
    %c0 = arith.constant 0 : index
    %c0_0 = arith.constant 0 : index
    %0 = vector.load %arg1[%c0, %c0_0] : memref<8x63xf32, #tpu.memory_space<vmem>>, vector<8x63xf32>
    %c0_1 = arith.constant 0 : index
    %c0_2 = arith.constant 0 : index
    %1 = vector.load %arg2[%c0_1, %c0_2] : memref<63x256xf32, #tpu.memory_space<vmem>>, vector<63x256xf32>
    %cst = arith.constant dense<0.000000e+00> : vector<8x256xf32>
    %2 = tpu.matmul %0, %1, %cst {dimension_numbers = #tpu.dot_dimension_numbers<[1], [0], [0], [1], [0, 0, 1, 1], [], []>} : vector<8x63xf32>, vector<63x256xf32>, vector<8x256xf32> -> vector<8x256xf32>
    %c0_3 = arith.constant 0 : index
    %c0_4 = arith.constant 0 : index
    %3 = vector.load %arg3[%c0_3, %c0_4] : memref<8x256xf32, #tpu.memory_space<vmem>>, vector<8x256xf32>
    tpu.vector_store %arg3[%c0_3, %c0_4], %2 {strides = array<i32>} : memref<8x256xf32, #tpu.memory_space<vmem>>, vector<8x256xf32>,
    return
  }
  func.func @transform_0(%arg0: i32) -> (i32, i32) {
    %c0_i32 = arith.constant 0 : i32
    %c0_i32_0 = arith.constant 0 : i32
    return %arg0, %c0_i32 : i32, i32
  }
  func.func @transform_1(%arg0: i32) -> (i32, i32) {
    %c0_i32 = arith.constant 0 : i32
    %c0_i32_0 = arith.constant 0 : i32
    %c0_i32_1 = arith.constant 0 : i32
    return %c0_i32, %c0_i32_0 : i32, i32
  }
  func.func @transform_2(%arg0: i32) -> (i32, i32) {
    %c0_i32 = arith.constant 0 : i32
    %c0_i32_0 = arith.constant 0 : i32
    return %arg0, %c0_i32 : i32, i32
  }
}

</mosaic_0001>

<bundles_post_ra>
// kernel: tpu_custom_call.1
= control target key start
LH: loop header
LB: loop body
LE: loop exit
PB: predicated region body
PF: predicated region fallthrough
CT: control target
= control target key end

     0   :  { %7 = vsyncpa [#allocation3], 0  ;;  %s320_s0 = inlined_call_operand.hbm [shape: f32[8,63], index: 0, kind: input, shape index: {}]   ;;  %s321_s1 = inlined_call_operand.hbm [shape: f32[63,256], index: 1, kind: input, shape index: {}]   ;;  %s322_s2 = inlined_call_operand.hbm [shape: f32[8,256], index: 2, kind: output, shape index: {}]  }
   0x1   :  { %8 = vsyncpa [#allocation6], 0 }
   0x2   :  { %9 = vsyncpa [#allocation4], 0  ;;  %s255_s9 = smov [#allocation2]   ;;  %s256_s11 = smov [#allocation5]  }
   0x3   :  { %s16_s10 = sshll.u32 %s255_s9, 4  ;;  %s25_s12 = sshll.u32 %s256_s11, 4  ;;  %s17_s10 = int_to_ptr.vmem [resolvable:$true] %s16_s10  ;;  %s277_s12 = int_to_ptr.vmem [resolvable:$true] %s25_s12 }
   0x4   :  { %s183_s15 = scalar_lea.hbm %s320_s0, 128 }
   0x5   :  { %p184_p0 = scmp.ne.s32.totalorder %s320_s0, %s183_s15  ;;  %p187_p1 = scmp.lt.u32.totalorder %s183_s15, %s320_s0 }
   0x7   :  { %p189_p2 = pnand %p187_p1, %p184_p0 }
   0x9   :  { %192 = shalt.err (!%p189_p2)
}
   0xa   :  { %s193_s20 = scalar_lea.vmem %s17_s10, 128  ;;  %p198_p4 = scmp.lt.s32.totalorder %s17_s10, %s17_s10 }
   0xb   :  { %p194_p3 = scmp.ne.s32.totalorder %s17_s10, %s193_s20  ;;  %p199_p5 = scmp.lt.s32.totalorder %s193_s20, %s193_s20 }
   0xd   :  { %p200_p6 = por %p199_p5, %p198_p4 }
   0xf   :  { %p201_p7 = pnand %p200_p6, %p194_p3 }
  0x11   :  { %204 = shalt.err (!%p201_p7)
}
  0x12   :  { %19 = dma.hbm_to_vmem [thread:$0]  %s320_s0, 128, %s17_s10, [#allocation3]  }
  0x13   :  { %s205_s25 = scalar_lea.hbm %s321_s1, 2048 }
  0x14   :  { %p206_p8 = scmp.ne.s32.totalorder %s321_s1, %s205_s25  ;;  %p209_p9 = scmp.lt.u32.totalorder %s205_s25, %s321_s1 }
  0x16   :  { %p211_p10 = pnand %p209_p9, %p206_p8 }
  0x18   :  { %214 = shalt.err (!%p211_p10)
}
  0x19   :  { %s215_s30 = scalar_lea.vmem %s277_s12, 2048  ;;  %p220_p12 = scmp.lt.s32.totalorder %s277_s12, %s277_s12 }
  0x1a   :  { %p216_p11 = scmp.ne.s32.totalorder %s277_s12, %s215_s30  ;;  %p221_p13 = scmp.lt.s32.totalorder %s215_s30, %s215_s30 }
  0x1c   :  { %p222_p0 = por %p221_p13, %p220_p12 }
  0x1e   :  { %p223_p1 = pnand %p222_p0, %p216_p11 }
  0x20   :  { %226 = shalt.err (!%p223_p1)
}
  0x21   :  { %s257_s0 = smov 256   ;;  %s258_s3 = smov 16  }
  0x22   :  { %31 = dma.hbm_to_vmem [thread:$0]  %s321_s1, 2048, %s277_s12, [#allocation6], %s257_s0, %s257_s0, %s258_s3  }
  0x23   :  { %249 = dma.done.wait [#allocation3], 128  }
  0x24   :  { %250 = vsyncadd [#allocation3], 4294967168 }
  0x25   :  { %251 = dma.done.wait [#allocation6], 2048  }
  0x26   :  { %252 = vsyncadd [#allocation6], 4294965248  ;;  %v259_v0 = vmov 0.0   ;;  %v40_v1 = vld [vmem:[#allocation5 + $0x8] sm:$0xff]  ;;  %v42_v2 = vld [vmem:[#allocation5 + $0x18] sm:$0xff]  ;;  %vm59_vm0 = vcmask 1046528  }
  0x27   :  { %130 = vmatprep.mubr.f32.mxu0 %v259_v0  ;;  %v39_v3 = vld [vmem:[#allocation5] sm:$0xff]  ;;  %v158_v4 = vpack.c.bf16 %v42_v2, %v40_v1  ;;  %v41_v5 = vld [vmem:[#allocation5 + $0x10] sm:$0xff]  ;;  %v44_v6 = vld [vmem:[#allocation5 + $0x28] sm:$0xff]  ;;  %vm260_vm1 = vmmov 1   ;;  %vm55_vm3 = vcmask 515072   ;;  %s261_s1 = smov [#allocation7]  }
  0x28   :  { %v46_v7 = vld [vmem:[#allocation5 + $0x38] sm:$0xff]  ;;  %v160_v8 = vpack.c.bf16 %v41_v5, %v39_v3  ;;  %v43_v10 = vld [vmem:[#allocation5 + $0x20] sm:$0xff]  ;;  %v45_v11 = vld [vmem:[#allocation5 + $0x30] sm:$0xff]  ;;  %s145_s6 = sshll.u32 %s261_s1, 4  ;;  %s146_s6 = int_to_ptr.vmem [resolvable:$true] %s145_s6 }
  0x29   :  { %v162_v9 = vpack.c.bf16 %v46_v7, %v44_v6  ;;  %v48_v12 = vld [vmem:[#allocation5 + $0x48] sm:$0xff]  ;;  %159 = vmatprep.subr.bf16.mxu0 %v158_v4  ;;  %v50_v13 = vld [vmem:[#allocation5 + $0x58] sm:$0xff]  ;;  %v164_v14 = vpack.c.bf16 %v45_v11, %v43_v10  ;;  %v47_v16 = vld [vmem:[#allocation5 + $0x40] sm:$0xff]  ;;  %s227_s7 = scalar_lea.vmem %s146_s6, 256  ;;  %p232_p3 = scmp.lt.s32.totalorder %s146_s6, %s146_s6 }
  0x2a   :  { %161 = vmatpush1.bf16.msra.mxu0 %v160_v8  ;;  %v166_v15 = vpack.c.bf16 %v50_v13, %v48_v12  ;;  %v49_v17 = vld [vmem:[#allocation5 + $0x50] sm:$0xff]  ;;  %v52_v18 = vld [vmem:[#allocation5 + $0x68] sm:$0xff]  ;;  %v54_v19 = vld [vmem:[#allocation5 + $0x78] sm:$0x7f]  ;;  %p228_p2 = scmp.ne.s32.totalorder %s146_s6, %s227_s7  ;;  %p233_p4 = scmp.lt.s32.totalorder %s227_s7, %s227_s7 }
  0x2b   :  { %163 = vmatprep.subr.bf16.mxu0 %v162_v9  ;;  %v168_v20 = vpack.c.bf16 %v49_v17, %v47_v16  ;;  %v170_v21 = vpack.c.bf16 %v54_v19, %v52_v18  ;;  %v51_v22 = vld [vmem:[#allocation5 + $0x60] sm:$0xff]  ;;  %v53_v23 = vld [vmem:[#allocation5 + $0x70] sm:$0x7f]  ;;  %vm171_vm2 = vmpackc.low %vm59_vm0, %vm260_vm1 }
  0x2c   :  { %v173_v24 = vpack.c.bf16 %v53_v23, %v51_v22  ;;  %v38_v25 = vld [vmem:[#allocation2] sm:$0xff]  ;;  %p234_p5 = por %p233_p4, %p232_p3 }
  0x2e   :  { %165 = vmatpush1.bf16.msra.mxu0 %v164_v14  ;;  %p235_p6 = pnand %p234_p5, %p228_p2 }
  0x2f   :  { %167 = vmatprep.subr.bf16.mxu0 %v166_v15 }
  0x32   :  { %169 = vmatpush1.bf16.msra.mxu0 %v168_v20 }
  0x33   :  { %172 = vmatprep.subr.msk.bf16.mxu0 %vm171_vm2, %v170_v21 }
  0x36   :  { %175 = vmatpush1.bf16.msk.msra.mxu0 %vm171_vm2, %v173_v24 }
  0x39   :  { %157 = vmatmul.mubr.msk.f32.vlgmr.msra.gmra.mrb[0].mxu0 %vm55_vm3, %v38_v25 }
 0x10c   :  { %v132_v26 = vpop.f32.mrb[0].mxu0 }
 0x10d   :  { %137 = vst [vmem:[#allocation7] sm:$0xff] %v132_v26  ;;  %v134_v27 = vpop.f32.mrb[1].mxu0 }
 0x10e   :  { %138 = vst [vmem:[#allocation7 + $0x8] sm:$0xff] %v134_v27 }
 0x10f   :  { %238 = shalt.err (!%p235_p6)
}
 0x110   :  { %s239_s10 = scalar_lea.hbm %s322_s2, 256 }
 0x111   :  { %p240_p7 = scmp.ne.s32.totalorder %s322_s2, %s239_s10  ;;  %p243_p8 = scmp.lt.u32.totalorder %s239_s10, %s322_s2 }
 0x113   :  { %p245_p9 = pnand %p243_p8, %p240_p7 }
 0x115   :  { %248 = shalt.err (!%p245_p9)
}
 0x116   :  { %148 = dma.vmem_to_hbm [thread:$0]  %s146_s6, 256, %s322_s2, [#allocation4]  }
 0x117   :  { %253 = dma.done.wait [#allocation4], 256  }
 0x118   :  { %254 = vsyncadd [#allocation4], 4294967040 }
 0x119   :  { %152 = vsyncpa [#allocation3], 1 }
 0x11a   :  { %153 = vsyncpa [#allocation6], 1 }
 0x11b   :  { %154 = vsyncpa [#allocation4], 1 }

</bundles_post_ra>
